<compile_context>
chip_gen: v7x
topology: tpu7x:2x2x1
jax: 0.10.0
libtpu: 0.0.40
codegen_flags: <defaults>
</compile_context>

<pallas_src>
import functools

import jax
import jax.numpy as jnp
from jax.experimental import pallas as pl
from jax.experimental.pallas import tpu as pltpu


def _round_up(x: int, m: int) -> int:
    return (x + m - 1) // m * m


def _decoder_kernel(x_ref, w1_ref, b1_ref, w2_ref, b2_ref, o_ref, acc_ref, *,
                    precision):
    h_idx = pl.program_id(1)

    @pl.when(h_idx == 0)
    def _():
        acc_ref[...] = jnp.zeros_like(acc_ref)

    # Hidden block: relu(x @ W1[:, h*TH:(h+1)*TH] + b1[h block]) in f32.
    x = x_ref[...].astype(w1_ref.dtype)            # cast to MXU operand dtype here
    hid = jnp.dot(x, w1_ref[...], preferred_element_type=jnp.float32,
                  precision=precision)
    hid = jnp.maximum(hid + b1_ref[...], 0.0)      # f32 VPU epilogue (v5e-safe)

    # Accumulate this hidden block's contribution to the second matmul.
    acc_ref[...] += jnp.dot(hid.astype(w2_ref.dtype), w2_ref[...],
                            preferred_element_type=jnp.float32,
                            precision=precision)

    @pl.when(h_idx == pl.num_programs(1) - 1)
    def _():
        o_ref[...] = jnp.maximum(acc_ref[...] + b2_ref[...], 0.0).astype(o_ref.dtype)


def sample_decoder(x, w1, b1, w2, b2, *, compute_dtype=None, precision=None,
                   single_buffer_resident=False):
    """Fused relu(relu(x @ W1 + b1) @ W2 + b2).

    x: (B, F); w1: (F, H); b1: (H,); w2: (H, F); b2: (F,)  ->  (B, F)

    compute_dtype: MXU operand dtype for x / W1 / W2 (default: bfloat16 when x
      is float32, else x.dtype).  Accumulation, bias-add and ReLU stay in f32.
    precision: forwarded to the in-kernel dots (e.g. jax.lax.Precision.HIGHEST
      for near-exact f32 MXU math when compute_dtype=float32).
    single_buffer_resident: use pl.Buffered(1) for blocks whose index never
      changes (halves resident-weight VMEM, mainly for v7x).  Off by default.
    """
    B, F = x.shape
    H = w1.shape[1]
    out_dtype = x.dtype

    if compute_dtype is not None:
        mxu_dtype = jnp.dtype(compute_dtype)
    elif x.dtype == jnp.float32:
        mxu_dtype = jnp.dtype(jnp.bfloat16)        # bf16 MXU operands, f32 accum
    else:
        mxu_dtype = jnp.dtype(x.dtype)
    elt = mxu_dtype.itemsize
    x_elt = jnp.dtype(x.dtype).itemsize
    out_elt = jnp.dtype(out_dtype).itemsize

    # ---- hidden-dim tiling (contraction of the 2nd matmul) ------------------
    # Keep the full weights VMEM-resident when small; otherwise tile H so each
    # (F, TH)/(TH, F) slice is ~<=4 MiB and the f32 hidden block stays small.
    if H <= 4096 and F * H * elt <= (6 << 20):
        TH, H_pad = H, H
    else:
        TH = max(128, min(4096, ((4 << 20) // max(F * elt, 1)) // 128 * 128))
        H_pad = _round_up(H, TH)
    num_h = H_pad // TH

    # ---- batch tiling --------------------------------------------------------
    # >= 2 tiles whenever possible so the "parallel" axis can use both v7x TCs;
    # rows rounded to the sublane-packing granularity of the MXU operand dtype.
    row_align = {1: 32, 2: 16}.get(elt, 8)
    target_tiles = max(2, pl.cdiv(B, 512)) if B >= 2 * row_align else 1
    TB = _round_up(pl.cdiv(B, target_tiles), row_align)

    def _act_bytes(tb):                    # activation-side VMEM for one config
        return (2 * tb * F * x_elt         # double-buffered x tiles
                + 2 * tb * F * out_elt     # double-buffered out tiles
                + tb * F * 4               # f32 accumulator scratch
                + tb * TH * 4)             # f32 hidden block temporary

    while TB > row_align and _act_bytes(TB) > (12 << 20):
        TB = _round_up(TB // 2, row_align)

    B_pad = _round_up(B, TB)
    num_b = B_pad // TB

    # ---- operand prep (no F/H inflation of x; batch-only pad when needed) ---
    x_p = x if B_pad == B else jnp.pad(x, ((0, B_pad - B), (0, 0)))
    if H_pad == H:
        w1_p = w1.astype(mxu_dtype)
        w2_p = w2.astype(mxu_dtype)
        b1_p = b1.astype(jnp.float32).reshape(1, H)
    else:   # zero-pad hidden dim: exactly neutral through bias + ReLU + matmul-2
        w1_p = jnp.zeros((F, H_pad), mxu_dtype).at[:, :H].set(w1.astype(mxu_dtype))
        w2_p = jnp.zeros((H_pad, F), mxu_dtype).at[:H, :].set(w2.astype(mxu_dtype))
        b1_p = jnp.zeros((1, H_pad), jnp.float32).at[0, :H].set(b1.astype(jnp.float32))
    b2_p = b2.astype(jnp.float32).reshape(1, F)

    # ---- VMEM accounting / compiler params -----------------------------------
    weights_constant = (num_h == 1)        # block index never changes over grid
    w_bufs = 1 if (single_buffer_resident and weights_constant) else 2
    est_bytes = (_act_bytes(TB)
                 + 2 * w_bufs * F * TH * elt                # W1 + W2 blocks
                 + w_bufs * 8 * _round_up(TH, 128) * 4      # b1 (layout-padded)
                 + w_bufs * 8 * _round_up(F, 128) * 4)      # b2 (layout-padded)
    vmem_limit = int(min(max(est_bytes * 1.4, 24 << 20), 62 << 20))

    cost = pl.CostEstimate(
        flops=4 * B_pad * F * H_pad,
        transcendentals=0,
        bytes_accessed=(B_pad * F * (x_elt + out_elt)
                        + 2 * F * H_pad * elt * (1 if weights_constant else num_b)
                        + (H_pad + F) * 4),
    )

    def _spec(shape, index_map, constant=False):
        if constant and single_buffer_resident:
            # Constant-index block: one buffer suffices (halves its VMEM use).
            return pl.BlockSpec(shape, index_map, pipeline_mode=pl.Buffered(1))
        return pl.BlockSpec(shape, index_map)

    out_p = pl.pallas_call(
        functools.partial(_decoder_kernel, precision=precision),
        out_shape=jax.ShapeDtypeStruct((B_pad, F), out_dtype),
        grid=(num_b, num_h),
        in_specs=[
            pl.BlockSpec((TB, F), lambda i, h: (i, 0)),               # x tile
            _spec((F, TH), lambda i, h: (0, h), weights_constant),    # W1 block
            _spec((1, TH), lambda i, h: (0, h), weights_constant),    # b1 block
            _spec((TH, F), lambda i, h: (h, 0), weights_constant),    # W2 block
            _spec((1, F), lambda i, h: (0, 0), True),                 # b2 (resident)
        ],
        out_specs=pl.BlockSpec((TB, F), lambda i, h: (i, 0)),
        scratch_shapes=[pltpu.VMEM((TB, F), jnp.float32)],            # f32 accumulator
        compiler_params=pltpu.CompilerParams(
            dimension_semantics=("parallel", "arbitrary"),
            vmem_limit_bytes=vmem_limit,
        ),
        cost_estimate=cost,
    )(x_p, w1_p, b1_p, w2_p, b2_p)

    return out_p if B_pad == B else out_p[:B]


def _reference(x, w1, b1, w2, b2):
    h = jnp.maximum(x @ w1 + b1, 0.0)
    return jnp.maximum(h @ w2 + b2, 0.0)


if __name__ == "__main__":
    key = jax.random.PRNGKey(0)
    k_x, k_w1, k_b1, k_w2, k_b2, k_big = jax.random.split(key, 6)

    # --- small shapes matching the module spec (B x F, hidden H) -------------
    feature_size, hidden_size, batch = 32, 64, 8
    x = jax.random.normal(k_x, (batch, feature_size), dtype=jnp.float32)
    lim1 = 1.0 / feature_size ** 0.5
    lim2 = 1.0 / hidden_size ** 0.5
    w1 = jax.random.uniform(k_w1, (feature_size, hidden_size), jnp.float32, -lim1, lim1)
    b1 = jax.random.uniform(k_b1, (hidden_size,), jnp.float32, -lim1, lim1)
    w2 = jax.random.uniform(k_w2, (hidden_size, feature_size), jnp.float32, -lim2, lim2)
    b2 = jax.random.uniform(k_b2, (feature_size,), jnp.float32, -lim2, lim2)

    ref = _reference(x, w1, b1, w2, b2)

    # Default path: bf16 MXU operands, f32 accumulation + epilogue.
    out_bf16 = jax.block_until_ready(sample_decoder(x, w1, b1, w2, b2))
    assert out_bf16.shape == (batch, feature_size)
    assert jnp.allclose(out_bf16, ref, atol=5e-2, rtol=5e-2)

    # Explicit f32 MXU operands: tight match against the f32 reference.
    out_f32 = jax.block_until_ready(
        sample_decoder(x, w1, b1, w2, b2, compute_dtype=jnp.float32))
    assert out_f32.shape == (batch, feature_size)
    assert jnp.allclose(out_f32, ref, atol=1e-5, rtol=1e-5)

    # --- larger hidden size: exercises the hidden-dim (reduction) tiling path
    F2, H2, B2 = 512, 8192, 48
    k2_x, k2_w1, k2_b1, k2_w2, k2_b2 = jax.random.split(k_big, 5)
    x2 = jax.random.normal(k2_x, (B2, F2), dtype=jnp.float32)
    l1, l2 = 1.0 / F2 ** 0.5, 1.0 / H2 ** 0.5
    w1b = jax.random.uniform(k2_w1, (F2, H2), jnp.float32, -l1, l1)
    b1b = jax.random.uniform(k2_b1, (H2,), jnp.float32, -l1, l1)
    w2b = jax.random.uniform(k2_w2, (H2, F2), jnp.float32, -l2, l2)
    b2b = jax.random.uniform(k2_b2, (F2,), jnp.float32, -l2, l2)

    ref2 = _reference(x2, w1b, b1b, w2b, b2b)
    out2 = jax.block_until_ready(sample_decoder(x2, w1b, b1b, w2b, b2b))
    assert out2.shape == (B2, F2)
    assert jnp.allclose(out2, ref2, atol=5e-2, rtol=5e-2)

    print("KERNEL_OK")
</pallas_src>

<mosaic_0001>
module attributes {stable_mosaic.version = 11 : i64} {
  func.func @_decoder_kernel(%arg0: i32, %arg1: i32, %arg2: memref<16x32xf32, #tpu.memory_space<vmem>>, %arg3: memref<32x64xbf16, #tpu.memory_space<vmem>>, %arg4: memref<1x64xf32, #tpu.memory_space<vmem>>, %arg5: memref<64x32xbf16, #tpu.memory_space<vmem>>, %arg6: memref<1x32xf32, #tpu.memory_space<vmem>>, %arg7: memref<16x32xf32, #tpu.memory_space<vmem>>, %arg8: memref<16x32xf32, #tpu.memory_space<vmem>>) attributes {dimension_semantics = [#tpu.dimension_semantics<parallel>, #tpu.dimension_semantics<arbitrary>], iteration_bounds = array<i64: 1, 1>, scalar_prefetch = 0 : i64, scratch_operands = 1 : i64, tpu.core_type = #tpu.core_type<tc>, window_params = [{transform_indices = @transform_0, window_bounds = array<i64: 16, 32>}, {transform_indices = @transform_1, window_bounds = array<i64: 32, 64>}, {transform_indices = @transform_2, window_bounds = array<i64: 1, 64>}, {transform_indices = @transform_3, window_bounds = array<i64: 64, 32>}, {pipeline_mode = #tpu.pipeline_mode<synchronous>, transform_indices = @transform_4, window_bounds = array<i64: 1, 32>}, {transform_indices = @transform_5, window_bounds = array<i64: 16, 32>}]} {
    %c0_i32 = arith.constant 0 : i32
    %0 = arith.cmpi eq, %arg1, %c0_i32 : i32
    %1 = arith.extui %0 : i1 to i32
    %c0_i32_0 = arith.constant 0 : i32
    %2 = arith.cmpi ne, %1, %c0_i32_0 : i32
    scf.if %2 {
      %cst_16 = arith.constant 0.000000e+00 : f32
      %21 = vector.broadcast %cst_16 : f32 to vector<16x32xf32>
      %c0_17 = arith.constant 0 : index
      %c0_18 = arith.constant 0 : index
      %22 = vector.load %arg8[%c0_17, %c0_18] : memref<16x32xf32, #tpu.memory_space<vmem>>, vector<16x32xf32>
      tpu.vector_store %arg8[%c0_17, %c0_18], %21 {strides = array<i32>} : memref<16x32xf32, #tpu.memory_space<vmem>>, vector<16x32xf32>,
    } else {
    }
    %c0 = arith.constant 0 : index
    %c0_1 = arith.constant 0 : index
    %3 = vector.load %arg2[%c0, %c0_1] : memref<16x32xf32, #tpu.memory_space<vmem>>, vector<16x32xf32>
    %4 = arith.truncf %3 : vector<16x32xf32> to vector<16x32xbf16>
    %c0_2 = arith.constant 0 : index
    %c0_3 = arith.constant 0 : index
    %5 = vector.load %arg3[%c0_2, %c0_3] : memref<32x64xbf16, #tpu.memory_space<vmem>>, vector<32x64xbf16>
    %cst = arith.constant dense<0.000000e+00> : vector<16x64xf32>
    %6 = tpu.matmul %4, %5, %cst {dimension_numbers = #tpu.dot_dimension_numbers<[1], [0], [0], [1], [0, 0, 1, 1], [], []>} : vector<16x32xbf16>, vector<32x64xbf16>, vector<16x64xf32> -> vector<16x64xf32>
    %c0_4 = arith.constant 0 : index
    %c0_5 = arith.constant 0 : index
    %7 = vector.load %arg4[%c0_4, %c0_5] : memref<1x64xf32, #tpu.memory_space<vmem>>, vector<1x64xf32>
    %8 = vector.broadcast %7 : vector<1x64xf32> to vector<16x64xf32>
    %9 = arith.addf %6, %8 : vector<16x64xf32>
    %cst_6 = arith.constant 0.000000e+00 : f32
    %10 = vector.broadcast %cst_6 : f32 to vector<16x64xf32>
    %11 = arith.maximumf %9, %10 : vector<16x64xf32>
    %c0_7 = arith.constant 0 : index
    %c0_8 = arith.constant 0 : index
    %12 = vector.load %arg8[%c0_7, %c0_8] : memref<16x32xf32, #tpu.memory_space<vmem>>, vector<16x32xf32>
    %13 = arith.truncf %11 : vector<16x64xf32> to vector<16x64xbf16>
    %c0_9 = arith.constant 0 : index
    %c0_10 = arith.constant 0 : index
    %14 = vector.load %arg5[%c0_9, %c0_10] : memref<64x32xbf16, #tpu.memory_space<vmem>>, vector<64x32xbf16>
    %cst_11 = arith.constant dense<0.000000e+00> : vector<16x32xf32>
    %15 = tpu.matmul %13, %14, %cst_11 {dimension_numbers = #tpu.dot_dimension_numbers<[1], [0], [0], [1], [0, 0, 1, 1], [], []>} : vector<16x64xbf16>, vector<64x32xbf16>, vector<16x32xf32> -> vector<16x32xf32>
    %16 = arith.addf %12, %15 : vector<16x32xf32>
    %c0_12 = arith.constant 0 : index
    %c0_13 = arith.constant 0 : index
    %17 = vector.load %arg8[%c0_12, %c0_13] : memref<16x32xf32, #tpu.memory_space<vmem>>, vector<16x32xf32>
    tpu.vector_store %arg8[%c0_12, %c0_13], %16 {strides = array<i32>} : memref<16x32xf32, #tpu.memory_space<vmem>>, vector<16x32xf32>,
    %c0_i32_14 = arith.constant 0 : i32
    %18 = arith.cmpi eq, %arg1, %c0_i32_14 : i32
    %19 = arith.extui %18 : i1 to i32
    %c0_i32_15 = arith.constant 0 : i32
    %20 = arith.cmpi ne, %19, %c0_i32_15 : i32
    scf.if %20 {
      %c0_16 = arith.constant 0 : index
      %c0_17 = arith.constant 0 : index
      %21 = vector.load %arg8[%c0_16, %c0_17] : memref<16x32xf32, #tpu.memory_space<vmem>>, vector<16x32xf32>
      %c0_18 = arith.constant 0 : index
      %c0_19 = arith.constant 0 : index
      %22 = vector.load %arg6[%c0_18, %c0_19] : memref<1x32xf32, #tpu.memory_space<vmem>>, vector<1x32xf32>
      %23 = vector.broadcast %22 : vector<1x32xf32> to vector<16x32xf32>
      %24 = arith.addf %21, %23 : vector<16x32xf32>
      %cst_20 = arith.constant 0.000000e+00 : f32
      %25 = vector.broadcast %cst_20 : f32 to vector<16x32xf32>
      %26 = arith.maximumf %24, %25 : vector<16x32xf32>
      %c0_21 = arith.constant 0 : index
      %c0_22 = arith.constant 0 : index
      %27 = vector.load %arg7[%c0_21, %c0_22] : memref<16x32xf32, #tpu.memory_space<vmem>>, vector<16x32xf32>
      tpu.vector_store %arg7[%c0_21, %c0_22], %26 {strides = array<i32>} : memref<16x32xf32, #tpu.memory_space<vmem>>, vector<16x32xf32>,
    } else {
    }
    return
  }
  func.func @transform_0(%arg0: i32, %arg1: i32) -> (i32, i32) {
    %c0_i32 = arith.constant 0 : i32
    %c0_i32_0 = arith.constant 0 : i32
    return %arg0, %c0_i32 : i32, i32
  }
  func.func @transform_1(%arg0: i32, %arg1: i32) -> (i32, i32) {
    %c0_i32 = arith.constant 0 : i32
    %c0_i32_0 = arith.constant 0 : i32
    return %c0_i32, %arg1 : i32, i32
  }
  func.func @transform_2(%arg0: i32, %arg1: i32) -> (i32, i32) {
    %c0_i32 = arith.constant 0 : i32
    %c0_i32_0 = arith.constant 0 : i32
    return %c0_i32, %arg1 : i32, i32
  }
  func.func @transform_3(%arg0: i32, %arg1: i32) -> (i32, i32) {
    %c0_i32 = arith.constant 0 : i32
    %c0_i32_0 = arith.constant 0 : i32
    return %arg1, %c0_i32 : i32, i32
  }
  func.func @transform_4(%arg0: i32, %arg1: i32) -> (i32, i32) {
    %c0_i32 = arith.constant 0 : i32
    %c0_i32_0 = arith.constant 0 : i32
    %c0_i32_1 = arith.constant 0 : i32
    return %c0_i32, %c0_i32_0 : i32, i32
  }
  func.func @transform_5(%arg0: i32, %arg1: i32) -> (i32, i32) {
    %c0_i32 = arith.constant 0 : i32
    %c0_i32_0 = arith.constant 0 : i32
    return %arg0, %c0_i32 : i32, i32
  }
}

</mosaic_0001>

<bundles_post_ra>
// kernel: tpu_custom_call.1
= control target key start
LH: loop header
LB: loop body
LE: loop exit
PB: predicated region body
PF: predicated region fallthrough
CT: control target
= control target key end

     0   :  { %v293_v1 = vmov 0.0   ;;  %vm294_vm0 = vmmov 0   ;;  %vm26_vm1 = vcmask 261120   ;;  %s377_s0 = inlined_call_operand.vmem [shape: f32[16,32], index: 0, kind: input, shape index: {}]   ;;  %s378_s1 = inlined_call_operand.vmem [shape: bf16[32,64], index: 1, kind: input, shape index: {}]   ;;  %s379_s2 = inlined_call_operand.vmem [shape: f32[1,64], index: 2, kind: input, shape index: {}]   ;;  %s380_s3 = inlined_call_operand.vmem [shape: bf16[64,32], index: 3, kind: input, shape index: {}]   ;;  %s381_s4 = inlined_call_operand.vmem [shape: f32[1,32], index: 4, kind: input, shape index: {}]   ;;  %s382_s5 = inlined_call_operand.hbm [shape: f32[16,32], index: 5, kind: output, shape index: {}]  }
   0x1   :  { %v263_v0 = vld [vmem:[%s378_s1] sm:$0xff]   ;;  %238 = vmatprep.subr.bf16.mxu0 %v293_v1  ;;  %v264_v2 = vld [vmem:[%s378_s1 + $0x8] sm:$0xff]   ;;  %246 = vmatprep.subr.bf16.mxu1 %v293_v1  ;;  %27 = vst.msk [vmem:[#allocation2] sm:$0xff] %vm26_vm1, %v293_v1  ;;  %28 = vst.msk [vmem:[#allocation2 + $0x8] sm:$0xff] %vm26_vm1, %v293_v1 }
   0x2   :  { %239 = vmatpush3.bf16.msra.mxu0 %v263_v0  ;;  %242 = vmatprep.mubr.msk.bf16.mxu0 %vm294_vm0, %v293_v1  ;;  %v29_v3 = vld [vmem:[%s377_s0] sm:$0xff]  ;;  %v30_v4 = vld [vmem:[%s377_s0 + $0x8] sm:$0xff] }
   0x3   :  { %240 = vmatprep.subr.bf16.mxu0 %v293_v1  ;;  %v265_v5 = vld [vmem:[%s380_s3] sm:$0xff]   ;;  %254 = vmatprep.mubr.msk.bf16.mxu1 %vm294_vm0, %v293_v1  ;;  %v266_v6 = vld [vmem:[%s380_s3 + $0x8] sm:$0xff]   ;;  %v31_v7 = vpack.c.bf16 %v30_v4, %v29_v3 }
   0x4   :  { %247 = vmatpush3.bf16.msra.mxu1 %v265_v5 }
   0x5   :  { %248 = vmatprep.subr.bf16.mxu1 %v293_v1 }
   0x6   :  { %241 = vmatpush3.bf16.msra.mxu0 %v264_v2 }
   0x7   :  { %10 = vsyncpa [#allocation4], 0  ;;  %v267_v8 = vld [vmem:[%s380_s3 + $0x10] sm:$0xff]   ;;  %v268_v9 = vld [vmem:[%s380_s3 + $0x18] sm:$0xff]   ;;  %vm137_vm2 = vcmask 523264   ;;  %s295_s9 = smov [#allocation3]  }
   0x8   :  { %249 = vmatpush3.bf16.msra.mxu1 %v266_v6  ;;  %v220_v10 = vld [vmem:[%s379_s2] ss:$0 sm:$0xff]  ;;  %v103_v22 = vld [vmem:[#allocation2 + $0x8] sm:$0xff]  ;;  %s209_s10 = sshll.u32 %s295_s9, 4  ;;  %s210_s10 = int_to_ptr.vmem [resolvable:$true] %s209_s10 }
   0x9   :  { %243 = vmatmul.mubr.msk.bf16.vlgmr.msra.gmra.mrb[0].mxu0 %vm26_vm1, %v31_v7  ;;  %250 = vmatprep.subr.bf16.mxu1 %v293_v1  ;;  %v102_v20 = vld [vmem:[#allocation2] sm:$0xff]  ;;  %s269_s11 = scalar_lea.vmem %s210_s10, 256  ;;  %p274_p1 = scmp.lt.s32.totalorder %s210_s10, %s210_s10 }
   0xa   :  { %v229_v28 = vld [vmem:[%s381_s4] ss:$0 sm:$0xff]  ;;  %p270_p0 = scmp.ne.s32.totalorder %s210_s10, %s269_s11  ;;  %p275_p2 = scmp.lt.s32.totalorder %s269_s11, %s269_s11 }
   0xc   :  { %251 = vmatpush3.bf16.msra.mxu1 %v267_v8  ;;  %p276_p3 = por %p275_p2, %p274_p1 }
   0xd   :  { %252 = vmatprep.subr.bf16.mxu1 %v293_v1 }
   0xe   :  { %p277_p4 = pnand %p276_p3, %p270_p0 }
  0x10   :  { %253 = vmatpush3.bf16.msra.mxu1 %v268_v9 }
  0xdc   :  { %v93_v11 = vpop.f32.mrb[0].mxu0 }
  0xdd   :  { %v94_v12 = vadd.f32 %v220_v10, %v93_v11  ;;  %v244_v13 = vpop.f32.mrb[1].mxu0 }
  0xde   :  { %v96_v14 = vpop.f32.mrb[2].mxu0 }
  0xdf   :  { %v97_v15 = vadd.f32 %v220_v10, %v96_v14  ;;  %v245_v16 = vpop.f32.mrb[3].mxu0  ;;  %v100_v17 = vmax.f32 %v94_v12, 0.0 }
  0xe1   :  { %v101_v18 = vmax.f32 %v97_v15, 0.0 }
  0xe3   :  { %v104_v19 = vpack.c.bf16 %v101_v18, %v100_v17 }
  0xe5   :  { %255 = vmatmul.mubr.msk.bf16.vlgmr.msra.gmra.mrb[0].mxu1 %vm137_vm2, %v104_v19 }
 0x1b8   :  { %v175_v21 = vpop.f32.mrb[0].mxu1 }
 0x1b9   :  { %v182_v23 = vadd.f32 %v175_v21, %v102_v20  ;;  %v256_v24 = vpop.f32.mrb[1].mxu1 }
 0x1ba   :  { %v178_v25 = vpop.f32.mrb[2].mxu1 }
 0x1bb   :  { %184 = vst.msk [vmem:[#allocation2] sm:$0xff] %vm26_vm1, %v182_v23  ;;  %v183_v26 = vadd.f32 %v178_v25, %v103_v22  ;;  %v257_v27 = vpop.f32.mrb[3].mxu1 }
 0x1bd   :  { %185 = vst.msk [vmem:[#allocation2 + $0x8] sm:$0xff] %vm26_vm1, %v183_v26 }
 0x1c2   :  { %v189_v29 = vld [vmem:[#allocation2] sm:$0xff] }
 0x1c3   :  { %v198_v30 = vadd.f32 %v229_v28, %v189_v29 }
 0x1c4   :  { %v190_v31 = vld [vmem:[#allocation2 + $0x8] sm:$0xff] }
 0x1c5   :  { %v199_v32 = vadd.f32 %v229_v28, %v190_v31  ;;  %v200_v33 = vmax.f32 %v198_v30, 0.0 }
 0x1c7   :  { %v201_v34 = vmax.f32 %v199_v32, 0.0  ;;  %202 = vst.msk [vmem:[#allocation3] sm:$0xff] %vm26_vm1, %v200_v33 }
 0x1c9   :  { %203 = vst.msk [vmem:[#allocation3 + $0x8] sm:$0xff] %vm26_vm1, %v201_v34 }
 0x1ca   :  { %280 = shalt.err (!%p277_p4)
}
 0x1cb   :  { %s281_s13 = scalar_lea.hbm %s382_s5, 256 }
 0x1cc   :  { %p282_p5 = scmp.ne.s32.totalorder %s382_s5, %s281_s13  ;;  %p285_p6 = scmp.lt.u32.totalorder %s281_s13, %s382_s5 }
 0x1ce   :  { %p287_p7 = pnand %p285_p6, %p282_p5 }
 0x1d0   :  { %290 = shalt.err (!%p287_p7)
}
 0x1d1   :  { %s296_s18 = smov 128   ;;  %s297_s19 = smov 8  }
 0x1d2   :  { %215 = dma.vmem_to_hbm [thread:$0]  %s210_s10, 256, %s382_s5, [#allocation4], %s296_s18, %s296_s18, %s297_s19  }
 0x1d3   :  { %291 = dma.done.wait [#allocation4], 256  }
 0x1d4   :  { %292 = vsyncadd [#allocation4], 4294967040 }
 0x1d5   :  { %219 = vsyncpa [#allocation4], 1 }

</bundles_post_ra>
